<compile_context>
chip_gen: v7x
topology: tpu7x:2x2x1
jax: 0.10.0
libtpu: 0.0.40
codegen_flags: <defaults>
</compile_context>

<pallas_src>
import jax
import jax.numpy as jnp
import numpy as np
from jax import lax
from jax.experimental import pallas as pl
from jax.experimental.pallas import tpu as pltpu


def _conv_to_banded_fused(w, width, col_scale):
    """HWIO conv weight (3,3,Ci,Co) -> dy-fused banded matrix (3*width*Ci, width*Co), bf16.

    Per-dy block b(dy) (rows [dy*width*Ci, (dy+1)*width*Ci)):
      b(dy)[wi*Ci+ci, wo*Co+co] = w[dy, dx, ci, co]  with wi = wo + dx - 1 (zero off-band),
    so for padded output row r:
      conv_out[r] = concat(xpad[r-1], xpad[r], xpad[r+1]) @ fused_matrix .
    W-padding is implicit in the clipped band; only H needs explicit zero rows.
    col_scale (width*Co,) is the folded eval-mode BN scale, applied to output columns.
    """
    kh, kw, ci, co = w.shape
    wn = np.asarray(w, np.float32)
    m = np.zeros((kh, width * ci, width * co), np.float32)
    for dy in range(kh):
        for dx in range(kw):
            for wo in range(width):
                wi = wo + dx - (kw // 2)
                if 0 <= wi < width:
                    m[dy, wi * ci:(wi + 1) * ci, wo * co:(wo + 1) * co] = wn[dy, dx]
    fused = np.concatenate([m[dy] for dy in range(kh)], axis=0)     # (kh*width*Ci, width*Co)
    fused = jnp.asarray(fused) * jnp.asarray(col_scale)[None, :]
    return fused.astype(jnp.bfloat16)


def _make_kernel(hp):
    """Kernel body closed over hp = H + 2 (padded rows per batch element)."""

    def kernel(x_ref, w1_ref, b1_ref, w2_ref, b2_ref, o_ref, l1_ref, l2_ref):
        # x_ref:  (1, Mp, W*Cin)  f32, Mp = B*(H+2): B H-padded lane-dense slabs stacked.
        # w1_ref: (3*W*Cin, W*Cr)  bf16 dy-fused banded conv1 weight, BN1 scale folded in.
        # b1_ref: (1, W*Cr)        f32 folded BN1 bias (conv bias + BN shift).
        # w2_ref: (3*W*Cr, W*Cout) bf16 dy-fused banded conv2 weight, BN2 scale folded in.
        # b2_ref: (1, W*Cout)      f32 folded BN2 bias.
        # o_ref:  (1, Mp, W*Cout)  f32 output in padded row layout (border rows = garbage,
        #                          sliced off wrapper-side).
        # l1_ref: (Mp, 3*W*Cin) bf16 scratch — im2col-over-dy LHS for conv1.
        # l2_ref: (Mp, 3*W*Cr)  bf16 scratch — im2col-over-dy LHS for conv2.
        mp = o_ref.shape[1]
        wcin = x_ref.shape[2]
        wcr = b1_ref.shape[1]

        # Interior-row mask: within each hp-row padded element, rows 1..hp-2 are valid.
        row = lax.broadcasted_iota(jnp.int32, (mp, 1), 0) % hp
        interior = jnp.logical_and(row >= 1, row <= hp - 2)

        x = x_ref[0]                                    # (Mp, W*Cin) f32, border rows are 0
        xb = x.astype(jnp.bfloat16)                     # single cast for the MXU path

        # conv1 LHS: row r = [ x[r-1] | x[r] | x[r+1] ] (dy taps side by side along lanes).
        # Every scratch element is rewritten each step -> safe under megacore grid splits.
        l1_ref[0:mp, wcin:2 * wcin] = xb
        l1_ref[1:mp, 0:wcin] = xb[0:mp - 1]
        l1_ref[0:1, 0:wcin] = jnp.zeros((1, wcin), jnp.bfloat16)
        l1_ref[0:mp - 1, 2 * wcin:3 * wcin] = xb[1:mp]
        l1_ref[mp - 1:mp, 2 * wcin:3 * wcin] = jnp.zeros((1, wcin), jnp.bfloat16)

        # conv1 (single matmul, K = 3*W*Cin) + folded BN1 bias + ReLU.  Zero the per-element
        # border rows so they act as conv2's zero H-padding.
        acc1 = jnp.dot(l1_ref[...], w1_ref[...], preferred_element_type=jnp.float32)
        h1 = jnp.where(interior, jnp.maximum(acc1 + b1_ref[...], 0.0), 0.0)  # (Mp, W*Cr) f32
        h1b = h1.astype(jnp.bfloat16)                   # single cast for the MXU path

        # conv2 LHS, same construction.
        l2_ref[0:mp, wcr:2 * wcr] = h1b
        l2_ref[1:mp, 0:wcr] = h1b[0:mp - 1]
        l2_ref[0:1, 0:wcr] = jnp.zeros((1, wcr), jnp.bfloat16)
        l2_ref[0:mp - 1, 2 * wcr:3 * wcr] = h1b[1:mp]
        l2_ref[mp - 1:mp, 2 * wcr:3 * wcr] = jnp.zeros((1, wcr), jnp.bfloat16)

        # conv2 (single matmul, K = 3*W*Cr) + folded BN2 bias + residual add + ReLU.
        acc2 = jnp.dot(l2_ref[...], w2_ref[...], preferred_element_type=jnp.float32)
        out = acc2 + b2_ref[...] + x                    # residual reads the f32 x block
        o_ref[0] = jnp.maximum(out, 0.0).astype(o_ref.dtype)   # full-128-lane unmasked store

    return kernel


def residual_block(x_slabs, w1, b1, w2, b2, *, padded_rows_per_elem):
    """x_slabs: (S, Mp, W*Cin) f32 — S grid steps of B stacked H-padded lane-dense slabs.
    Returns (S, Mp, W*Cout) f32 in the same padded row layout (borders are garbage)."""
    S, Mp, WCin = x_slabs.shape
    WCr = w1.shape[1]
    WCout = w2.shape[1]
    assert WCout == WCin, "residual add requires out_channels == in_channels"
    assert w1.shape[0] == 3 * WCin and w2.shape[0] == 3 * WCr
    assert Mp % padded_rows_per_elem == 0

    kernel = _make_kernel(padded_rows_per_elem)
    return pl.pallas_call(
        kernel,
        out_shape=jax.ShapeDtypeStruct((S, Mp, WCout), x_slabs.dtype),
        grid_spec=pltpu.PrefetchScalarGridSpec(
            num_scalar_prefetch=0,
            grid=(S,),
            in_specs=[
                pl.BlockSpec((1, Mp, WCin), lambda s: (s, 0, 0)),
                pl.BlockSpec((3 * WCin, WCr), lambda s: (0, 0)),
                pl.BlockSpec((1, WCr), lambda s: (0, 0)),
                pl.BlockSpec((3 * WCr, WCout), lambda s: (0, 0)),
                pl.BlockSpec((1, WCout), lambda s: (0, 0)),
            ],
            out_specs=pl.BlockSpec((1, Mp, WCout), lambda s: (s, 0, 0)),
            scratch_shapes=[
                pltpu.VMEM((Mp, 3 * WCin), jnp.bfloat16),   # conv1 im2col-over-dy LHS
                pltpu.VMEM((Mp, 3 * WCr), jnp.bfloat16),    # conv2 im2col-over-dy LHS
            ],
        ),
        compiler_params=pltpu.CompilerParams(
            dimension_semantics=("parallel",),   # steps independent; v7x: one per TensorCore
        ),
    )(x_slabs, w1, b1, w2, b2)


def _reference(x_nhwc, w1, cb1, g1, be1, rm1, rv1, w2, cb2, g2, be2, rm2, rv2, eps):
    """Pure-JAX reference mirroring the PyTorch forward (eval-mode BN).  Conv operands are
    cast to bf16 with f32 accumulation, matching the kernel's MXU path."""
    def conv(x, w, b):
        y = lax.conv_general_dilated(
            x.astype(jnp.bfloat16), w.astype(jnp.bfloat16),
            window_strides=(1, 1), padding="SAME",
            dimension_numbers=("NHWC", "HWIO", "NHWC"),
            preferred_element_type=jnp.float32)
        return y + b

    def bn(y, g, be, m, v):
        return (y - m) / jnp.sqrt(v + eps) * g + be

    h = jax.nn.relu(bn(conv(x_nhwc, w1, cb1), g1, be1, rm1, rv1))
    out = bn(conv(h, w2, cb2), g2, be2, rm2, rv2) + x_nhwc
    return jax.nn.relu(out)


if __name__ == "__main__":
    N, Cin, H, W = 4, 8, 16, 16        # NCHW input (4, 8, 16, 16); W*Cin = 128 lanes
    B = 2                              # batch elements stacked per grid step (M = B*(H+2))
    Cr = Cin // 4                      # res_channels = in_channels // 4
    Cout = Cin                         # residual add requires out == in channels
    eps = 1e-5
    assert N % B == 0
    S = N // B                         # grid steps (2 -> both v7x TensorCores get work)

    keys = jax.random.split(jax.random.PRNGKey(0), 13)
    x_nchw = jax.random.normal(keys[0], (N, Cin, H, W), jnp.float32)

    # conv1 / bn1 parameters (deterministic synthetic init)
    w1 = 0.1 * jax.random.normal(keys[1], (3, 3, Cin, Cr), jnp.float32)
    cb1 = 0.1 * jax.random.normal(keys[2], (Cr,), jnp.float32)
    g1 = 1.0 + 0.1 * jax.random.normal(keys[3], (Cr,), jnp.float32)
    be1 = 0.1 * jax.random.normal(keys[4], (Cr,), jnp.float32)
    rm1 = 0.1 * jax.random.normal(keys[5], (Cr,), jnp.float32)
    rv1 = jnp.abs(1.0 + 0.1 * jax.random.normal(keys[6], (Cr,), jnp.float32))

    # conv2 / bn2 parameters
    w2 = 0.1 * jax.random.normal(keys[7], (3, 3, Cr, Cout), jnp.float32)
    cb2 = 0.1 * jax.random.normal(keys[8], (Cout,), jnp.float32)
    g2 = 1.0 + 0.1 * jax.random.normal(keys[9], (Cout,), jnp.float32)
    be2 = 0.1 * jax.random.normal(keys[10], (Cout,), jnp.float32)
    rm2 = 0.1 * jax.random.normal(keys[11], (Cout,), jnp.float32)
    rv2 = jnp.abs(1.0 + 0.1 * jax.random.normal(keys[12], (Cout,), jnp.float32))

    # Fold eval-mode BatchNorm (+ conv bias) into per-channel scale / bias.
    s1 = g1 / jnp.sqrt(rv1 + eps)
    bb1 = (cb1 - rm1) * s1 + be1
    s2 = g2 / jnp.sqrt(rv2 + eps)
    bb2 = (cb2 - rm2) * s2 + be2

    # Wrapper-side layout plumbing:
    #   NCHW -> NHWC -> lane-dense (N, H, W*C) -> zero H-pad -> stack B elements per step.
    x_nhwc = jnp.transpose(x_nchw, (0, 2, 3, 1))
    x_slab = x_nhwc.reshape(N, H, W * Cin)
    x_pad = jnp.pad(x_slab, ((0, 0), (1, 1), (0, 0)))            # zero border rows via DMA
    x_grp = x_pad.reshape(S, B * (H + 2), W * Cin)

    # dy-fused banded bf16 weights with BN scale folded in; biases tiled across W lanes.
    s1_l = jnp.tile(s1, W)                                       # (W*Cr,)
    s2_l = jnp.tile(s2, W)                                       # (W*Cout,)
    W1 = _conv_to_banded_fused(w1, W, s1_l)                      # (3*W*Cin, W*Cr)  bf16
    W2 = _conv_to_banded_fused(w2, W, s2_l)                      # (3*W*Cr, W*Cout) bf16
    b1_l = jnp.tile(bb1, W).reshape(1, W * Cr)
    b2_l = jnp.tile(bb2, W).reshape(1, W * Cout)

    out_grp = residual_block(x_grp, W1, b1_l, W2, b2_l, padded_rows_per_elem=H + 2)
    out_grp = jax.block_until_ready(out_grp)

    out_pad = out_grp.reshape(N, H + 2, W * Cout)
    out_nhwc = out_pad[:, 1:H + 1, :].reshape(N, H, W, Cout)     # drop padded border rows
    out_nchw = jnp.transpose(out_nhwc, (0, 3, 1, 2))             # back to PyTorch NCHW

    ref = _reference(x_nhwc, w1, cb1, g1, be1, rm1, rv1,
                     w2, cb2, g2, be2, rm2, rv2, eps)
    assert out_nchw.shape == (N, Cout, H, W)
    err = float(jnp.max(jnp.abs(out_nhwc - ref)))
    assert jnp.allclose(out_nhwc, ref, atol=1e-2, rtol=1e-2), (
        f"mismatch vs JAX reference: max abs err = {err}")

    print("KERNEL_OK")
</pallas_src>

<mosaic_0001>
module attributes {stable_mosaic.version = 11 : i64} {
  func.func @kernel(%arg0: i32, %arg1: memref<1x36x128xf32, #tpu.memory_space<vmem>>, %arg2: memref<384x32xbf16, #tpu.memory_space<vmem>>, %arg3: memref<1x32xf32, #tpu.memory_space<vmem>>, %arg4: memref<96x128xbf16, #tpu.memory_space<vmem>>, %arg5: memref<1x128xf32, #tpu.memory_space<vmem>>, %arg6: memref<1x36x128xf32, #tpu.memory_space<vmem>>, %arg7: memref<36x384xbf16, #tpu.memory_space<vmem>>, %arg8: memref<36x96xbf16, #tpu.memory_space<vmem>>) attributes {dimension_semantics = [#tpu.dimension_semantics<parallel>], iteration_bounds = array<i64: 2>, scalar_prefetch = 0 : i64, scratch_operands = 2 : i64, tpu.core_type = #tpu.core_type<tc>, window_params = [{transform_indices = @transform_0, window_bounds = array<i64: 1, 36, 128>}, {pipeline_mode = #tpu.pipeline_mode<synchronous>, transform_indices = @transform_1, window_bounds = array<i64: 384, 32>}, {pipeline_mode = #tpu.pipeline_mode<synchronous>, transform_indices = @transform_2, window_bounds = array<i64: 1, 32>}, {pipeline_mode = #tpu.pipeline_mode<synchronous>, transform_indices = @transform_3, window_bounds = array<i64: 96, 128>}, {pipeline_mode = #tpu.pipeline_mode<synchronous>, transform_indices = @transform_4, window_bounds = array<i64: 1, 128>}, {transform_indices = @transform_5, window_bounds = array<i64: 1, 36, 128>}]} {
    %0 = tpu.iota {dimensions = array<i32: 0>} : vector<36x1xi32>
    %c18_i32 = arith.constant 18 : i32
    %c0_i32 = arith.constant 0 : i32
    %1 = arith.cmpi eq, %c18_i32, %c0_i32 : i32
    %c1_i32 = arith.constant 1 : i32
    %2 = arith.select %1, %c1_i32, %c18_i32 : i32
    %3 = vector.broadcast %2 : i32 to vector<36x1xi32>
    %4 = arith.remsi %0, %3 : vector<36x1xi32>
    %c0_i32_0 = arith.constant 0 : i32
    %5 = vector.broadcast %c0_i32_0 : i32 to vector<36x1xi32>
    %6 = arith.cmpi ne, %4, %5 : vector<36x1xi32>
    %c0_i32_1 = arith.constant 0 : i32
    %7 = vector.broadcast %c0_i32_1 : i32 to vector<36x1xi32>
    %8 = arith.cmpi slt, %4, %7 : vector<36x1xi32>
    %c0_i32_2 = arith.constant 0 : i32
    %9 = arith.cmpi slt, %2, %c0_i32_2 : i32
    %10 = vector.broadcast %9 : i1 to vector<36x1xi1>
    %11 = vector.broadcast %10 : vector<36x1xi1> to vector<36x1xi1>
    %12 = arith.xori %8, %11 : vector<36x1xi1>
    %13 = arith.andi %12, %6 : vector<36x1xi1>
    %14 = vector.broadcast %2 : i32 to vector<36x1xi32>
    %15 = arith.addi %4, %14 : vector<36x1xi32>
    %16 = arith.select %13, %15, %4 : vector<36x1xi1>, vector<36x1xi32>
    %c1_i32_3 = arith.constant 1 : i32
    %17 = vector.broadcast %c1_i32_3 : i32 to vector<36x1xi32>
    %18 = arith.cmpi sge, %16, %17 : vector<36x1xi32>
    %c16_i32 = arith.constant 16 : i32
    %19 = vector.broadcast %c16_i32 : i32 to vector<36x1xi32>
    %20 = arith.cmpi sle, %16, %19 : vector<36x1xi32>
    %21 = arith.andi %18, %20 : vector<36x1xi1>
    %c0 = arith.constant 0 : index
    %c0_4 = arith.constant 0 : index
    %c0_5 = arith.constant 0 : index
    %22 = vector.load %arg1[%c0, %c0_4, %c0_5] : memref<1x36x128xf32, #tpu.memory_space<vmem>>, vector<1x36x128xf32>
    %23 = vector.shape_cast %22 : vector<1x36x128xf32> to vector<36x128xf32>
    %24 = arith.truncf %23 : vector<36x128xf32> to vector<36x128xbf16>
    %c0_6 = arith.constant 0 : index
    %c128 = arith.constant 128 : index
    %25 = vector.load %arg7[%c0_6, %c128] : memref<36x384xbf16, #tpu.memory_space<vmem>>, vector<36x128xbf16>
    tpu.vector_store %arg7[%c0_6, %c128], %24 {strides = array<i32>} : memref<36x384xbf16, #tpu.memory_space<vmem>>, vector<36x128xbf16>,
    %26 = vector.extract_strided_slice %24 {offsets = [0, 0], sizes = [35, 128], strides = [1, 1]} : vector<36x128xbf16> to vector<35x128xbf16>
    %c1 = arith.constant 1 : index
    %c0_7 = arith.constant 0 : index
    %27 = vector.load %arg7[%c1, %c0_7] : memref<36x384xbf16, #tpu.memory_space<vmem>>, vector<35x128xbf16>
    tpu.vector_store %arg7[%c1, %c0_7], %26 {strides = array<i32>} : memref<36x384xbf16, #tpu.memory_space<vmem>>, vector<35x128xbf16>,
    %cst = arith.constant 0.000000e+00 : bf16
    %28 = vector.broadcast %cst : bf16 to vector<1x128xbf16>
    %c0_8 = arith.constant 0 : index
    %c0_9 = arith.constant 0 : index
    %29 = vector.load %arg7[%c0_8, %c0_9] : memref<36x384xbf16, #tpu.memory_space<vmem>>, vector<1x128xbf16>
    tpu.vector_store %arg7[%c0_8, %c0_9], %28 {strides = array<i32>} : memref<36x384xbf16, #tpu.memory_space<vmem>>, vector<1x128xbf16>,
    %30 = vector.extract_strided_slice %24 {offsets = [1, 0], sizes = [35, 128], strides = [1, 1]} : vector<36x128xbf16> to vector<35x128xbf16>
    %c0_10 = arith.constant 0 : index
    %c256 = arith.constant 256 : index
    %31 = vector.load %arg7[%c0_10, %c256] : memref<36x384xbf16, #tpu.memory_space<vmem>>, vector<35x128xbf16>
    tpu.vector_store %arg7[%c0_10, %c256], %30 {strides = array<i32>} : memref<36x384xbf16, #tpu.memory_space<vmem>>, vector<35x128xbf16>,
    %cst_11 = arith.constant 0.000000e+00 : bf16
    %32 = vector.broadcast %cst_11 : bf16 to vector<1x128xbf16>
    %c35 = arith.constant 35 : index
    %c256_12 = arith.constant 256 : index
    %33 = vector.load %arg7[%c35, %c256_12] : memref<36x384xbf16, #tpu.memory_space<vmem>>, vector<1x128xbf16>
    tpu.vector_store %arg7[%c35, %c256_12], %32 {strides = array<i32>} : memref<36x384xbf16, #tpu.memory_space<vmem>>, vector<1x128xbf16>,
    %c0_13 = arith.constant 0 : index
    %c0_14 = arith.constant 0 : index
    %34 = vector.load %arg7[%c0_13, %c0_14] : memref<36x384xbf16, #tpu.memory_space<vmem>>, vector<36x384xbf16>
    %c0_15 = arith.constant 0 : index
    %c0_16 = arith.constant 0 : index
    %35 = vector.load %arg2[%c0_15, %c0_16] : memref<384x32xbf16, #tpu.memory_space<vmem>>, vector<384x32xbf16>
    %cst_17 = arith.constant dense<0.000000e+00> : vector<36x32xf32>
    %36 = tpu.matmul %34, %35, %cst_17 {dimension_numbers = #tpu.dot_dimension_numbers<[1], [0], [0], [1], [0, 0, 1, 1], [], []>} : vector<36x384xbf16>, vector<384x32xbf16>, vector<36x32xf32> -> vector<36x32xf32>
    %c0_18 = arith.constant 0 : index
    %c0_19 = arith.constant 0 : index
    %37 = vector.load %arg3[%c0_18, %c0_19] : memref<1x32xf32, #tpu.memory_space<vmem>>, vector<1x32xf32>
    %38 = vector.broadcast %37 : vector<1x32xf32> to vector<36x32xf32>
    %39 = arith.addf %36, %38 : vector<36x32xf32>
    %cst_20 = arith.constant 0.000000e+00 : f32
    %40 = vector.broadcast %cst_20 : f32 to vector<36x32xf32>
    %41 = arith.maximumf %39, %40 : vector<36x32xf32>
    %cst_21 = arith.constant 0.000000e+00 : f32
    %42 = vector.shape_cast %21 : vector<36x1xi1> to vector<36x1xi1>
    %43 = vector.broadcast %42 : vector<36x1xi1> to vector<36x32xi1>
    %44 = vector.broadcast %cst_21 : f32 to vector<36x32xf32>
    %45 = arith.select %43, %41, %44 : vector<36x32xi1>, vector<36x32xf32>
    %46 = arith.truncf %45 : vector<36x32xf32> to vector<36x32xbf16>
    %c0_22 = arith.constant 0 : index
    %c32 = arith.constant 32 : index
    %47 = vector.load %arg8[%c0_22, %c32] : memref<36x96xbf16, #tpu.memory_space<vmem>>, vector<36x32xbf16>
    tpu.vector_store %arg8[%c0_22, %c32], %46 {strides = array<i32>} : memref<36x96xbf16, #tpu.memory_space<vmem>>, vector<36x32xbf16>,
    %48 = vector.extract_strided_slice %46 {offsets = [0, 0], sizes = [35, 32], strides = [1, 1]} : vector<36x32xbf16> to vector<35x32xbf16>
    %c1_23 = arith.constant 1 : index
    %c0_24 = arith.constant 0 : index
    %49 = vector.load %arg8[%c1_23, %c0_24] : memref<36x96xbf16, #tpu.memory_space<vmem>>, vector<35x32xbf16>
    tpu.vector_store %arg8[%c1_23, %c0_24], %48 {strides = array<i32>} : memref<36x96xbf16, #tpu.memory_space<vmem>>, vector<35x32xbf16>,
    %cst_25 = arith.constant 0.000000e+00 : bf16
    %50 = vector.broadcast %cst_25 : bf16 to vector<1x32xbf16>
    %c0_26 = arith.constant 0 : index
    %c0_27 = arith.constant 0 : index
    %51 = vector.load %arg8[%c0_26, %c0_27] : memref<36x96xbf16, #tpu.memory_space<vmem>>, vector<1x32xbf16>
    tpu.vector_store %arg8[%c0_26, %c0_27], %50 {strides = array<i32>} : memref<36x96xbf16, #tpu.memory_space<vmem>>, vector<1x32xbf16>,
    %52 = vector.extract_strided_slice %46 {offsets = [1, 0], sizes = [35, 32], strides = [1, 1]} : vector<36x32xbf16> to vector<35x32xbf16>
    %c0_28 = arith.constant 0 : index
    %c64 = arith.constant 64 : index
    %53 = vector.load %arg8[%c0_28, %c64] : memref<36x96xbf16, #tpu.memory_space<vmem>>, vector<35x32xbf16>
    tpu.vector_store %arg8[%c0_28, %c64], %52 {strides = array<i32>} : memref<36x96xbf16, #tpu.memory_space<vmem>>, vector<35x32xbf16>,
    %cst_29 = arith.constant 0.000000e+00 : bf16
    %54 = vector.broadcast %cst_29 : bf16 to vector<1x32xbf16>
    %c35_30 = arith.constant 35 : index
    %c64_31 = arith.constant 64 : index
    %55 = vector.load %arg8[%c35_30, %c64_31] : memref<36x96xbf16, #tpu.memory_space<vmem>>, vector<1x32xbf16>
    tpu.vector_store %arg8[%c35_30, %c64_31], %54 {strides = array<i32>} : memref<36x96xbf16, #tpu.memory_space<vmem>>, vector<1x32xbf16>,
    %c0_32 = arith.constant 0 : index
    %c0_33 = arith.constant 0 : index
    %56 = vector.load %arg8[%c0_32, %c0_33] : memref<36x96xbf16, #tpu.memory_space<vmem>>, vector<36x96xbf16>
    %c0_34 = arith.constant 0 : index
    %c0_35 = arith.constant 0 : index
    %57 = vector.load %arg4[%c0_34, %c0_35] : memref<96x128xbf16, #tpu.memory_space<vmem>>, vector<96x128xbf16>
    %cst_36 = arith.constant dense<0.000000e+00> : vector<36x128xf32>
    %58 = tpu.matmul %56, %57, %cst_36 {dimension_numbers = #tpu.dot_dimension_numbers<[1], [0], [0], [1], [0, 0, 1, 1], [], []>} : vector<36x96xbf16>, vector<96x128xbf16>, vector<36x128xf32> -> vector<36x128xf32>
    %c0_37 = arith.constant 0 : index
    %c0_38 = arith.constant 0 : index
    %59 = vector.load %arg5[%c0_37, %c0_38] : memref<1x128xf32, #tpu.memory_space<vmem>>, vector<1x128xf32>
    %60 = vector.broadcast %59 : vector<1x128xf32> to vector<36x128xf32>
    %61 = arith.addf %58, %60 : vector<36x128xf32>
    %62 = arith.addf %61, %23 : vector<36x128xf32>
    %cst_39 = arith.constant 0.000000e+00 : f32
    %63 = vector.broadcast %cst_39 : f32 to vector<36x128xf32>
    %64 = arith.maximumf %62, %63 : vector<36x128xf32>
    %c0_40 = arith.constant 0 : index
    %c0_41 = arith.constant 0 : index
    %c0_42 = arith.constant 0 : index
    %65 = vector.load %arg6[%c0_40, %c0_41, %c0_42] : memref<1x36x128xf32, #tpu.memory_space<vmem>>, vector<1x36x128xf32>
    %66 = vector.shape_cast %65 : vector<1x36x128xf32> to vector<36x128xf32>
    %67 = vector.shape_cast %64 : vector<36x128xf32> to vector<1x36x128xf32>
    tpu.vector_store %arg6[%c0_40, %c0_41, %c0_42], %67 {strides = array<i32>} : memref<1x36x128xf32, #tpu.memory_space<vmem>>, vector<1x36x128xf32>,
    return
  }
  func.func @transform_0(%arg0: i32) -> (i32, i32, i32) {
    %c0_i32 = arith.constant 0 : i32
    %c0_i32_0 = arith.constant 0 : i32
    %c0_i32_1 = arith.constant 0 : i32
    return %arg0, %c0_i32, %c0_i32_0 : i32, i32, i32
  }
  func.func @transform_1(%arg0: i32) -> (i32, i32) {
    %c0_i32 = arith.constant 0 : i32
    %c0_i32_0 = arith.constant 0 : i32
    %c0_i32_1 = arith.constant 0 : i32
    return %c0_i32, %c0_i32_0 : i32, i32
  }
  func.func @transform_2(%arg0: i32) -> (i32, i32) {
    %c0_i32 = arith.constant 0 : i32
    %c0_i32_0 = arith.constant 0 : i32
    %c0_i32_1 = arith.constant 0 : i32
    return %c0_i32, %c0_i32_0 : i32, i32
  }
  func.func @transform_3(%arg0: i32) -> (i32, i32) {
    %c0_i32 = arith.constant 0 : i32
    %c0_i32_0 = arith.constant 0 : i32
    %c0_i32_1 = arith.constant 0 : i32
    return %c0_i32, %c0_i32_0 : i32, i32
  }
  func.func @transform_4(%arg0: i32) -> (i32, i32) {
    %c0_i32 = arith.constant 0 : i32
    %c0_i32_0 = arith.constant 0 : i32
    %c0_i32_1 = arith.constant 0 : i32
    return %c0_i32, %c0_i32_0 : i32, i32
  }
  func.func @transform_5(%arg0: i32) -> (i32, i32, i32) {
    %c0_i32 = arith.constant 0 : i32
    %c0_i32_0 = arith.constant 0 : i32
    %c0_i32_1 = arith.constant 0 : i32
    return %arg0, %c0_i32, %c0_i32_0 : i32, i32, i32
  }
}

</mosaic_0001>

<bundles_post_ra>
// kernel: tpu_custom_call.1
= control target key start
LH: loop header
LB: loop body
LE: loop exit
PB: predicated region body
PF: predicated region fallthrough
CT: control target
= control target key end

     0   :  { %s1524_s18 = smov 0   ;;  %s1876_s0 = inlined_call_operand.vmem [shape: f32[2,36,128], index: 0, kind: input, shape index: {}]   ;;  %s1877_s1 = inlined_call_operand.vmem [shape: bf16[384,32], index: 1, kind: input, shape index: {}]   ;;  %s1878_s2 = inlined_call_operand.vmem [shape: f32[1,32], index: 2, kind: input, shape index: {}]   ;;  %s1879_s3 = inlined_call_operand.vmem [shape: bf16[96,128], index: 3, kind: input, shape index: {}]   ;;  %s1880_s4 = inlined_call_operand.vmem [shape: f32[1,128], index: 4, kind: input, shape index: {}]   ;;  %s1881_s5 = inlined_call_operand.vmem [shape: f32[2,36,128], index: 5, kind: output, shape index: {}]  }
   0x1 LB: > { %s1221_s19 = sadd.s32 4294967295, %s1488_s18   ;;  %p1225_p0 = scmp.ge.s32.totalorder %s1488_s18, 1  ;;  %s1488_s18 = sphi %s1524_s18, %s15_s18  }
   0x2   : > { %p187_p1 = scmp.lt.s32.totalorder %s1488_s18, 3 }
   0x4   : > { %p188_p2 = pnand %p1225_p0, %p187_p1 }
   0x5   : > { %v1438_v0 = vld [vmem:[%s1877_s1 + $0x40] sm:$0xff] (!%p188_p2)   ;;  %v1490_v2 = vmov (!%p188_p2), 0.0   ;;  %v1441_v4 = vld [vmem:[%s1877_s1 + $0x48] sm:$0xff] (!%p188_p2)   ;;  %v1444_v7 = vld [vmem:[%s1877_s1 + $0x50] sm:$0xff] (!%p188_p2)   ;;  %vm1882_vm0 = vmmov (!%p188_p2), 0   ;;  %p215_p3 = scmp.lt.s32.totalorder (!%p188_p2), %s1221_s19, 1 }
   0x6   : > { %191 = sbr.rel (%p188_p2) target bundleno = 646 (0x286), region = 40  ;;  %v1439_v1 = vld [vmem:[%s1877_s1] sm:$0xff] (!%p188_p2)   ;;  %1351 = vmatprep.subr.bf16.mxu1 (!%p188_p2), %v1490_v2  ;;  %1297 = vmatprep.subr.bf16.mxu0 (!%p188_p2), %v1438_v0  ;;  %v1442_v5 = vld [vmem:[%s1877_s1 + $0x8] sm:$0xff] (!%p188_p2)   ;;  %v1445_v8 = vld [vmem:[%s1877_s1 + $0x10] sm:$0xff] (!%p188_p2)   ;;  %vm409_vm1 = vcmask (!%p188_p2), 1043456   ;;  %vm419_vm5 = vcmask (!%p188_p2), 1040384  }
   0x7   : > { %v1440_v3 = vld [vmem:[%s1877_s1 + $0x80] sm:$0xff] (!%p188_p2)   ;;  %1298 = vmatpush3.bf16.msra.mxu0 (!%p188_p2), %v1439_v1  ;;  %v1443_v6 = vld [vmem:[%s1877_s1 + $0x88] sm:$0xff] (!%p188_p2)   ;;  %1367 = vmatprep.mubr.msk.bf16.mxu1 (!%p188_p2), %vm1882_vm0, %v1490_v2  ;;  %v1446_v9 = vld [vmem:[%s1877_s1 + $0x90] sm:$0xff] (!%p188_p2)   ;;  %vm1885_vm2 = vsmask.f32 (!%p188_p2), 256  ;;  %vm460_vm11 = vcmask (!%p188_p2), 1041408  }
   0x8   : > { %1352 = vmatpush3.bf16.msra.mxu1 (!%p188_p2), %v1440_v3  ;;  %1299 = vmatprep.subr.bf16.mxu0 (!%p188_p2), %v1441_v4  ;;  %v1447_v10 = vld [vmem:[%s1877_s1 + $0x58] sm:$0xff] (!%p188_p2)   ;;  %v1450_v13 = vld [vmem:[%s1877_s1 + $0x60] sm:$0xff] (!%p188_p2)   ;;  %v1453_v16 = vld [vmem:[%s1877_s1 + $0x68] sm:$0xff] (!%p188_p2)   ;;  %vm359_vm3 = vsmask.f32 (!%p188_p2), 4368  ;;  %vm466_vm15 = vcmask (!%p188_p2), 1041409  }
   0x9   : > { %1353 = vmatprep.subr.bf16.mxu1 (!%p188_p2), %v1490_v2  ;;  %v1448_v11 = vld [vmem:[%s1877_s1 + $0x18] sm:$0xff] (!%p188_p2)   ;;  %v1451_v14 = vld [vmem:[%s1877_s1 + $0x20] sm:$0xff] (!%p188_p2)   ;;  %v1454_v17 = vld [vmem:[%s1877_s1 + $0x28] sm:$0xff] (!%p188_p2)   ;;  %vm1886_vm4 = vsmask.f32 (!%p188_p2), 7938  ;;  %s1492_s28 = smov (!%p188_p2), 32  }
   0xa   : > { %v1449_v12 = vld [vmem:[%s1877_s1 + $0x98] sm:$0xff] (!%p188_p2)   ;;  %v1452_v15 = vld [vmem:[%s1877_s1 + $0xa0] sm:$0xff] (!%p188_p2)   ;;  %v1455_v18 = vld [vmem:[%s1877_s1 + $0xa8] sm:$0xff] (!%p188_p2)   ;;  %vm424_vm6 = vsmask.f32 (!%p188_p2), 3328 }
   0xb   : > { %1300 = vmatpush3.bf16.msra.mxu0 (!%p188_p2), %v1442_v5  ;;  %v1456_v19 = vld [vmem:[%s1877_s1 + $0x70] sm:$0xff] (!%p188_p2)   ;;  %v1459_v24 = vld [vmem:[%s1877_s1 + $0x78] sm:$0xff] (!%p188_p2)   ;;  %vm425_vm7 = vsmask.f32 (!%p188_p2), 7440  ;;  %vm1646_vm8 = vmor (!%p188_p2), %vm1885_vm2, %vm359_vm3  ;;  %vm1884_vm13 = vsmask.f32 (!%p188_p2), 1280 }
   0xc   : > { %1354 = vmatpush3.bf16.msra.mxu1 (!%p188_p2), %v1443_v6  ;;  %1301 = vmatprep.subr.bf16.mxu0 (!%p188_p2), %v1444_v7  ;;  %v1457_v20 = vld [vmem:[%s1877_s1 + $0x30] sm:$0xff] (!%p188_p2)   ;;  %v1460_v27 = vld [vmem:[%s1877_s1 + $0x38] sm:$0xff] (!%p188_p2)   ;;  %vm1656_vm9 = vmand (!%p188_p2), %vm409_vm1, %vm1886_vm4  ;;  %vm1883_vm1 = vsmask.f32 (!%p188_p2), 7942 }
   0xd   : > { %1355 = vmatprep.subr.bf16.mxu1 %v1490_v2  ;;  %s1907_s19 = smov (!%p215_p3, %s1221_s19), 1  ;;  %v1458_v23 = vld [vmem:[%s1877_s1 + $0xb0] sm:$0xff]   ;;  %v1464_v42 = vld [vmem:[%s1877_s1 + $0xb8] sm:$0xff]   ;;  %vm1665_vm10 = vmor %vm424_vm6, %vm425_vm7 }
   0xe   : > { %s1415_s29 = smul.u32 40, %s1907_s19  ;;  %v412_v34 = vld [vmem:[#allocation2] sm:$0xf]  ;;  %vm1685_vm12 = vmand %vm419_vm5, %vm1885_vm2 }
   0xf   : > { %1302 = vmatpush3.bf16.msra.mxu0 %v1445_v8  ;;  %vm462_vm14 = vmand %vm460_vm11, %vm1884_vm13 }
  0x10   : > { %1356 = vmatpush3.bf16.msra.mxu1 %v1446_v9  ;;  %1303 = vmatprep.subr.bf16.mxu0 %v1447_v10  ;;  %s1608_s13 = scalar_lea.vmem %s1876_s0, %s1415_s29  ;;  %vm468_vm3 = vmand %vm466_vm15, %vm1883_vm1  ;;  %s224_s24 = scalar_lea.vmem %s1881_s5, %s1415_s29 }
  0x11   : > { %1357 = vmatprep.subr.bf16.mxu1 %v1490_v2  ;;  %v1615_v21 = vld [vmem:[%s1608_s13] sm:$0xff]  ;;  %v1618_v22 = vld [vmem:[%s1608_s13 + $0x8] sm:$0xff]  ;;  %v1635_v32 = vld [vmem:[%s1608_s13 + $0x10] sm:$0xff] }
  0x12   : > { %v1287_v25 = vpack.c.bf16 %v1615_v21, %v1615_v21  ;;  %v1288_v26 = vpack.c.bf16 %v1618_v22, %v1618_v22  ;;  %v1638_v33 = vld [vmem:[%s1608_s13 + $0x18] sm:$0xff]  ;;  %v1289_v35 = vpack.c.bf16 %v1635_v32, %v1635_v32  ;;  %v1661_v48 = vld [vmem:[%s1608_s13 + $0x20] sm:$0xf]  ;;  %s1493_s13 = smov 64  }
  0x13   : > { %1304 = vmatpush3.bf16.msra.mxu0 %v1448_v11  ;;  %v1290_v36 = vpack.c.bf16 %v1638_v33, %v1638_v33  ;;  %v1291_v5 = vpack.c.bf16 %v1661_v48, %v1661_v48 }
  0x14   : > { %1358 = vmatpush3.bf16.msra.mxu1 %v1449_v12  ;;  %1305 = vmatprep.subr.bf16.mxu0 %v1450_v13  ;;  %353 = vst [vmem:[#allocation2 + $0x4] sm:$0xf] %v1287_v25  ;;  %354 = vst [vmem:[#allocation2 + $0x10] sm:$0xf] %v1288_v26  ;;  %v362_v28 = vshrl.u32 %v1287_v25, 16  ;;  %v365_v29 = vshll.u32 %v1287_v25, 16 }
  0x15   : > { %1359 = vmatprep.subr.bf16.mxu1 %v1490_v2  ;;  %v370_v30 = vshrl.u32 %v1288_v26, 16  ;;  %v373_v31 = vshll.u32 %v1288_v26, 16  ;;  %v382_v45 = vshll.u32 %v1289_v35, 16  ;;  %355 = vst [vmem:[#allocation2 + $0x1c] sm:$0xf] %v1289_v35  ;;  %v379_v47 = vshrl.u32 %v1289_v35, 16 }
  0x16   : > { %v364_v38 = vrot.slane %v362_v28, 7  ;;  %v427_v40 = vrot.slane %v362_v28, 4  ;;  %v428_v41 = vrot.slane %v365_v29, 5  ;;  %356 = vst [vmem:[#allocation2 + $0x28] sm:$0xf] %v1290_v36  ;;  %v388_v61 = vshrl.u32 %v1290_v36, 16 }
  0x17   : > { %1306 = vmatpush3.bf16.msra.mxu0 %v1451_v14  ;;  %v372_v39 = vrot.slane %v370_v30, 7  ;;  %v433_v44 = vrot.slane %v370_v30, 4  ;;  %v431_v46 = vrot.slane %v373_v31, 5  ;;  %v436_v55 = vrot.slane %v382_v45, 5  ;;  %357 = vst [vmem:[#allocation2 + $0x34] sm:$0x3] %v1291_v5 }
  0x18   : > { %1360 = vmatpush3.bf16.msra.mxu1 %v1452_v15  ;;  %1307 = vmatprep.subr.bf16.mxu0 %v1453_v16  ;;  %v367_v49 = vor.u32 %v365_v29, %v364_v38  ;;  %v368_v50 = vrot.slane %v364_v38, 4  ;;  %v429_v52 = vor.u32 %v428_v41, %v427_v40  ;;  %v381_v57 = vrot.slane %v379_v47, 7 }
  0x19   : > { %1361 = vmatprep.subr.bf16.mxu1 %v1490_v2  ;;  %v375_v51 = vor.u32 %v373_v31, %v372_v39  ;;  %v434_v54 = vor.u32 %v433_v44, %v431_v46  ;;  %v377_v56 = vrot.slane %v372_v39, 4  ;;  %v391_v1 = vshll.u32 %v1290_v36, 16 }
  0x1a   : > { %v413_v59 = vsel %vm1656_vm9, %v367_v49, %v412_v34  ;;  %v430_v60 = vrot.slane %v429_v52, 4  ;;  %v384_v63 = vor.u32 %v382_v45, %v381_v57  ;;  %v386_v0 = vrot.slane %v381_v57, 4  ;;  %v463_v34 = vld [vmem:[#allocation2 + $0x38] sm:$0x3] }
  0x1b   : > { %1308 = vmatpush3.bf16.msra.mxu0 %v1454_v17  ;;  %v376_v58 = vsel %vm1646_vm8, %v368_v50, %v375_v51  ;;  %414 = vst [vmem:[#allocation2] sm:$0xf] %v413_v59  ;;  %v435_v62 = vrot.slane %v434_v54, 4  ;;  %v390_v4 = vrot.slane %v388_v61, 7  ;;  %v438_v6 = vrot.slane %v379_v47, 4 }
  0x1c   : > { %1362 = vmatpush3.bf16.msra.mxu1 %v1455_v18  ;;  %1309 = vmatprep.subr.bf16.mxu0 %v1456_v19  ;;  %415 = vst [vmem:[#allocation2 + $0xc] sm:$0xf] %v376_v58  ;;  %v432_v3 = vsel %vm1665_vm10, %v430_v60, %v431_v46  ;;  %v385_v8 = vsel %vm1646_vm8, %v377_v56, %v384_v63  ;;  %v441_v9 = vrot.slane %v391_v1, 5  ;;  %v443_v10 = vrot.slane %v388_v61, 4 }
  0x1d   : > { %1363 = vmatprep.subr.bf16.mxu1 %v1490_v2  ;;  %v437_v7 = vsel %vm1665_vm10, %v435_v62, %v436_v55  ;;  %456 = vst [vmem:[#allocation2 + $0x8] sm:$0xf] %v432_v3  ;;  %v393_v11 = vor.u32 %v391_v1, %v390_v4  ;;  %416 = vst [vmem:[#allocation2 + $0x18] sm:$0xf] %v385_v8  ;;  %v400_v12 = vshll.u32 %v1291_v5, 16  ;;  %v397_v15 = vshrl.u32 %v1291_v5, 16 }
  0x1e   : > { %457 = vst [vmem:[#allocation2 + $0x14] sm:$0xf] %v437_v7  ;;  %v439_v13 = vor.u32 %v438_v6, %v436_v55  ;;  %v444_v14 = vor.u32 %v443_v10, %v441_v9  ;;  %v1466_v40 = vld [vmem:[#allocation2 + $0x1c] ss:$12 sps:$4 sm:$0xff]   ;;  %v226_v52 = vlaneseq }
  0x1f   : > { %1310 = vmatpush3.bf16.msra.mxu0 %v1457_v20  ;;  %v394_v17 = vsel %vm1646_vm8, %v386_v0, %v393_v11  ;;  %v446_v19 = vrot.slane %v400_v12, 5  ;;  %v448_v25 = vrot.slane %v397_v15, 4 }
  0x20   : > { %1364 = vmatpush3.bf16.msra.mxu1 %v1458_v23  ;;  %1311 = vmatprep.subr.bf16.mxu0 %v1459_v24  ;;  %v440_v18 = vrot.slane %v439_v13, 4  ;;  %417 = vst [vmem:[#allocation2 + $0x24] sm:$0xf] %v394_v17  ;;  %v445_v20 = vrot.slane %v444_v14, 4  ;;  %v395_v23 = vrot.slane %v390_v4, 4  ;;  %v399_v24 = vrot.slane %v397_v15, 7 }
  0x21   : > { %1365 = vmatprep.subr.bf16.mxu1 %v1490_v2  ;;  %v449_v31 = vor.u32 %v448_v25, %v446_v19  ;;  %v227_v54 = vshrl.u32 %v226_v52, 7 }
  0x22   : > { %v421_v26 = vld [vmem:[#allocation2] sm:$0x1]  ;;  %v447_v29 = vsel %vm1665_vm10, %v445_v20, %v446_v19  ;;  %v402_v30 = vor.u32 %v400_v12, %v399_v24 }
  0x23   : > { %1312 = vmatpush3.bf16.msra.mxu0 %v1460_v27  ;;  %v442_v27 = vsel %vm1665_vm10, %v440_v18, %v441_v9  ;;  %v422_v28 = vsel %vm1685_vm12, 0, %v421_v26  ;;  %459 = vst [vmem:[#allocation2 + $0x2c] sm:$0xf] %v447_v29  ;;  %v450_v38 = vrot.slane %v449_v31, 4  ;;  %v228_v55 = vadd.s32 8, %v227_v54 }
  0x24   : > { %1366 = vmatpush3.bf16.msra.mxu1 %v1464_v42  ;;  %1379 = vmatprep.subr.bf16.mxu0 %v1490_v2  ;;  %458 = vst [vmem:[#allocation2 + $0x20] sm:$0xf] %v442_v27  ;;  %423 = vst [vmem:[#allocation2] sm:$0x1] %v422_v28  ;;  %v403_v36 = vsel %vm1646_vm8, %v395_v23, %v402_v30  ;;  %v1463_v42 = vld [vmem:[#allocation2 + $0x4] ss:$12 sps:$4 sm:$0xff]  }
  0x25   : > { %1403 = vmatprep.subr.bf16.mxu1 %v1490_v2  ;;  %v1465_v35 = vld [vmem:[#allocation2 + $0x8] ss:$12 sps:$4 sm:$0xff]   ;;  %418 = vst [vmem:[#allocation2 + $0x30] sm:$0x3] %v403_v36  ;;  %v464_v39 = vsel %vm462_vm14, %v450_v38, %v463_v34  ;;  %756 = vmatprep.mubr.bf16.mxu0 %v1463_v42  ;;  %v1710_v56 = vmul.u32.u64.low 3817748708, %v227_v54  ;;  %v1711_v57 = vmul.u32.u64.high 3817748708, %v227_v54, %v1710_v56 }
  0x26   : > { %465 = vst [vmem:[#allocation2 + $0x38] sm:$0x3] %v464_v39  ;;  %v1713_v58 = vmul.u32.u64.low 3817748708, %v228_v55  ;;  %v1714_v59 = vmul.u32.u64.high 3817748708, %v228_v55, %v1713_v58  ;;  %v229_v60 = vadd.s32 16, %v227_v54  ;;  %v230_v61 = vadd.s32 24, %v227_v54 }
  0x27   : > { %1368 = vmatmul.mubr.bf16.vlgmr.msra.gmra.mrb[0].mxu1 %v1465_v35  ;;  %v1468_v47 = vld [vmem:[#allocation2 + $0x18] ss:$12 sps:$4 sm:$0xff]   ;;  %v238_v62 = vshrl.u32 %v1711_v57, 4  ;;  %v231_v5 = vadd.s32 32, %v227_v54  ;;  %v1733_v29 = vld [vmem:[%s1878_s2] ss:$0 sm:$0xff] }
  0x28   : > { %1371 = vmatprep.mubr.msk.bf16.mxu1 %vm1882_vm0, %v1490_v2  ;;  %v1717_v63 = vmul.u32.u64.low 3817748708, %v229_v60  ;;  %v1718_v0 = vmul.u32.u64.high 3817748708, %v229_v60, %v1717_v63  ;;  %v249_v1 = vshrl.u32 %v1714_v59, 4 }
  0x29   : > { %v1721_v3 = vmul.u32.u64.low 3817748708, %v230_v61  ;;  %v1722_v4 = vmul.u32.u64.high 3817748708, %v230_v61, %v1721_v3  ;;  %v239_v6 = vmul.u32 18, %v238_v62 }
  0x2a   : > { %v250_v7 = vmul.u32 18, %v249_v1  ;;  %v1724_v8 = vmul.u32.u64.low 3817748708, %v231_v5  ;;  %v1725_v9 = vmul.u32.u64.high 3817748708, %v231_v5, %v1724_v8  ;;  %v260_v11 = vshrl.u32 %v1718_v0, 4 }
  0x2b   : > { %v1461_v41 = vld [vmem:[#allocation2] ss:$12 sps:$4 sm:$0xff]   ;;  %v240_v10 = vsub.s32 %v227_v54, %v239_v6  ;;  %v271_v14 = vshrl.u32 %v1722_v4, 4 }
  0x2c   : > { %v1469_v43 = vld [vmem:[#allocation2 + $0x20] ss:$12 sps:$4 sm:$0xff]   ;;  %757 = vmatmul.mubr.bf16.vlgmr.msra.gmra.mrb[0].mxu0 %v1461_v41  ;;  %v480_v45 = vld [vmem:[#allocation2 + $0x30] sm:$0x33]  ;;  %v251_v13 = vsub.s32 %v228_v55, %v250_v7  ;;  %v261_v16 = vmul.u32 18, %v260_v11  ;;  %v282_v23 = vshrl.u32 %v1725_v9, 4 }
  0x2d   : > { %764 = vmatprep.mubr.bf16.mxu0 %v1466_v40  ;;  %v469_v44 = vld [vmem:[#allocation2 + $0x38] sm:$0x2]  ;;  %v1241_v49 = vcombine.high %v480_v45, %v480_v45  ;;  %v1472_v50 = vld [vmem:[#allocation2 + $0x38] ss:$0 sps:$4 sm:$0x33]   ;;  %v1240_v51 = vcombine.low %v480_v45, %v480_v45  ;;  %vm287_vm5 = vcmp.ne.s32.totalorder %v240_v10, 0 }
  0x2e   : > { %v470_v46 = vsel %vm468_vm3, 0, %v469_v44  ;;  %vm292_vm6 = vcmp.lt.s32.totalorder %v240_v10, 0  ;;  %v302_v18 = vadd.s32 18, %v240_v10  ;;  %vm288_vm9 = vcmp.ne.s32.totalorder %v251_v13, 0  ;;  %v1473_v11 = vld [vmem:[%s1879_s3] sm:$0xff]  }
  0x2f   : > { %1372 = vmatmul.mubr.bf16.gmra.mrb[4].mxu1 %v1469_v43  ;;  %471 = vst [vmem:[#allocation2 + $0x38] sm:$0x2] %v470_v46  ;;  %vm297_vm7 = vmand %vm292_vm6, %vm287_vm5  ;;  %vm293_vm11 = vcmp.lt.s32.totalorder %v251_v13, 0  ;;  %v272_v20 = vmul.u32 18, %v271_v14  ;;  %v262_v24 = vsub.s32 %v229_v60, %v261_v16  ;;  %v303_v25 = vadd.s32 18, %v251_v13  ;;  %1380 = vmatpush3.bf16.msra.mxu0 %v1473_v11 }
  0x30   : > { %1375 = vmatprep.mubr.msk.bf16.mxu1 %vm1882_vm0, %v1490_v2  ;;  %v307_v27 = vsel %vm297_vm7, %v302_v18, %v240_v10  ;;  %vm298_vm12 = vmand %vm293_vm11, %vm288_vm9  ;;  %v283_v34 = vmul.u32 18, %v282_v23  ;;  %1409 = vmatpush3.bf16.msra.mxu1 %v1473_v11 }
  0x31   : > { %v273_v31 = vsub.s32 %v230_v61, %v272_v20  ;;  %vm289_vm14 = vcmp.ne.s32.totalorder %v262_v24, 0  ;;  %vm294_vm15 = vcmp.lt.s32.totalorder %v262_v24, 0  ;;  %vm312_vm3 = vcmp.ge.s32.totalorder %v307_v27, 1  ;;  %1404 = vmatprep.subr.bf16.mxu1 %v1490_v2  ;;  %1381 = vmatprep.subr.bf16.mxu0 %v1490_v2 }
  0x32   : > { %v308_v40 = vsel %vm298_vm12, %v303_v25, %v251_v13  ;;  %vm317_vm5 = vcmp.le.s32.totalorder %v307_v27, 16  ;;  %v304_v44 = vadd.s32 18, %v262_v24  ;;  %vm299_vm6 = vmand %vm294_vm15, %vm289_vm14  ;;  %v284_v46 = vsub.s32 %v231_v5, %v283_v34 }
  0x33   : > { %vm290_vm7 = vcmp.ne.s32.totalorder %v273_v31, 0  ;;  %vm295_vm9 = vcmp.lt.s32.totalorder %v273_v31, 0  ;;  %vm313_vm11 = vcmp.ge.s32.totalorder %v308_v40, 1  ;;  %vm322_vm1 = vmand %vm312_vm3, %vm317_vm5 }
  0x34   : > { %765 = vmatmul.mubr.bf16.gmra.mrb[4].mxu0 %v1468_v47  ;;  %v309_v55 = vsel %vm299_vm6, %v304_v44, %v262_v24  ;;  %vm300_vm12 = vmand %vm295_vm9, %vm290_vm7  ;;  %vm291_vm2 = vcmp.ne.s32.totalorder %v284_v46, 0  ;;  %vm296_vm14 = vcmp.lt.s32.totalorder %v284_v46, 0  ;;  %v306_v4 = vadd.s32 18, %v284_v46 }
  0x35   : > { %772 = vmatprep.mubr.bf16.mxu0 %v1241_v49  ;;  %vm314_vm15 = vcmp.ge.s32.totalorder %v309_v55, 1  ;;  %vm319_vm4 = vcmp.le.s32.totalorder %v309_v55, 16  ;;  %vm942_vm7 = vcmask 257024   ;;  %vm1901_vm9 = vsmask.f32 7938 }
  0x37   : > { %1376 = vmatmul.mubr.bf16.gmra.mrb[8].mxu1 %v1472_v50  ;;  %v305_v50 = vadd.s32 18, %v273_v31 }
  0x38   : > { %1395 = vmatprep.mubr.msk.bf16.mxu1 %vm1882_vm0, %v1490_v2 }
  0x39   : > { %v310_v63 = vsel %vm300_vm12, %v305_v50, %v273_v31  ;;  %vm953_vm12 = vcmask 253952  }
  0x3c   : > { %773 = vmatmul.mubr.bf16.gmra.mrb[8].mxu0 %v1240_v51 }
  0x3d   : > { %1391 = vmatprep.mubr.msk.bf16.mxu0 %vm1882_vm0, %v1490_v2  ;;  %vm318_vm0 = vcmp.le.s32.totalorder %v308_v40, 16 }
  0x3e   : > { %vm323_vm13 = vmand %vm313_vm11, %vm318_vm0 }
  0x3f   : > { %vm1744_vm0 = vmand %vm296_vm14, %vm291_vm2  ;;  %vm1902_vm14 = vsmask.f32 256 }
  0x40   : > { %vm1756_vm2 = vmand %vm314_vm15, %vm319_vm4 }
  0x41   : > { %vm943_vm11 = vmand %vm942_vm7, %vm1901_vm9 }
  0x42   : > { %vm954_vm15 = vmand %vm953_vm12, %vm1902_vm14 }
  0xfa   : > { %v814_v12 = vpop.f32.mrb[0].mxu1 }
  0xfb   : > { %v1369_v15 = vpop.f32.mrb[1].mxu1 }
  0xfc   : > { %v817_v17 = vpop.f32.mrb[2].mxu1 }
  0xfd   : > { %v1370_v19 = vpop.f32.mrb[3].mxu1 }
  0xff   : > { %v1313_v26 = vpop.f32.mrb[0].mxu0 }
 0x100   : > { %v1314_v28 = vpop.f32.mrb[1].mxu0 }
 0x101   : > { %v1315_v35 = vadd.f32 %v1314_v28, %v1313_v26  ;;  %v1316_v36 = vpop.f32.mrb[2].mxu0  ;;  %v311_v26 = vsel %vm1744_vm0, %v306_v4, %v284_v46  ;;  %vm951_vm0 = vcmask 254976  }
 0x102   : > { %v822_v30 = vpop.f32.mrb[4].mxu1  ;;  %v1317_v39 = vpop.f32.mrb[3].mxu0  ;;  %vm316_vm3 = vcmp.ge.s32.totalorder %v311_v26, 1  ;;  %vm321_vm5 = vcmp.le.s32.totalorder %v311_v26, 16 }
 0x103   : > { %v1373_v38 = vpop.f32.mrb[5].mxu1  ;;  %v759_v42 = vadd.f32 %v1315_v35, %v1733_v29  ;;  %v1318_v43 = vadd.f32 %v1317_v39, %v1316_v36  ;;  %vm326_vm6 = vmand %vm316_vm3, %vm321_vm5  ;;  %vm1007_vm3 = vcmask 779777   ;;  %vm1904_vm5 = vsmask.f32 7942 }
 0x104   : > { %v825_v41 = vpop.f32.mrb[6].mxu1  ;;  %v1474_v38 = vld [vmem:[%s1879_s3 + $0x8] sm:$0xff]  }
 0x105   : > { %v1374_v45 = vpop.f32.mrb[7].mxu1  ;;  %v815_v47 = vadd.f32 %v814_v12, %v759_v42  ;;  %v762_v49 = vadd.f32 %v1318_v43, %v1733_v29  ;;  %1410 = vmatpush3.bf16.msra.mxu1 %v1474_v38  ;;  %1382 = vmatpush3.bf16.msra.mxu0 %v1474_v38 }
 0x106   : > { %1405 = vmatprep.subr.bf16.mxu1 %v1490_v2  ;;  %1383 = vmatprep.subr.bf16.mxu0 %v1490_v2 }
 0x107   : > { %v836_v51 = vmax.f32 %v815_v47, 0.0  ;;  %v818_v52 = vadd.f32 %v817_v17, %v762_v49  ;;  %v1319_v54 = vpop.f32.mrb[4].mxu0 }
 0x108   : > { %v1320_v56 = vpop.f32.mrb[5].mxu0 }
 0x109   : > { %v851_v57 = vsel %vm322_vm1, %v836_v51, 0.0  ;;  %v837_v58 = vmax.f32 %v818_v52, 0.0  ;;  %v1321_v59 = vadd.f32 %v1320_v56, %v1319_v54  ;;  %v1322_v60 = vpop.f32.mrb[6].mxu0  ;;  %vm320_vm1 = vcmp.le.s32.totalorder %v310_v63, 16 }
 0x10a   : > { %v1292_v61 = vpack.c.bf16 %v851_v57, %v851_v57  ;;  %v1323_v62 = vpop.f32.mrb[7].mxu0  ;;  %v830_v5 = vpop.f32.mrb[8].mxu1 }
 0x10b   : > { %v852_v0 = vsel %vm323_vm13, %v837_v58, 0.0  ;;  %v767_v1 = vadd.f32 %v1321_v59, %v1733_v29  ;;  %v1324_v3 = vadd.f32 %v1323_v62, %v1322_v60  ;;  %v1377_v10 = vpop.f32.mrb[9].mxu1  ;;  %vm315_vm13 = vcmp.ge.s32.totalorder %v310_v63, 1  ;;  %v1475_v63 = vld [vmem:[%s1879_s3 + $0x10] sm:$0xff]  }
 0x10c   : > { %v895_v6 = vshrl.u32 %v1292_v61, 16  ;;  %v898_v7 = vshll.u32 %v1292_v61, 16  ;;  %v1739_v8 = vpack.c.bf16 %v852_v0, %v852_v0  ;;  %872 = vrot.lane.b32.xlu0 %v1292_v61, %s1492_s28  ;;  %v833_v14 = vpop.f32.mrb[10].mxu1  ;;  %vm1766_vm4 = vmand %vm315_vm13, %vm320_vm1  ;;  %1411 = vmatpush3.bf16.msra.mxu1 %v1475_v63  ;;  %vm997_vm13 = vcmask 781824  }
 0x10d   : > { %v823_v12 = vadd.f32 %v822_v30, %v767_v1  ;;  %v770_v13 = vadd.f32 %v1324_v3, %v1733_v29  ;;  %v1378_v19 = vpop.f32.mrb[11].mxu1  ;;  %1406 = vmatprep.subr.bf16.mxu1 %v1490_v2  ;;  %1384 = vmatpush3.bf16.msra.mxu0 %v1475_v63  ;;  %vm1002_vm1 = vcmask 779776  }
 0x10e   : > { %v897_v15 = vrot.slane %v895_v6, 7  ;;  %v903_v16 = vshrl.u32 %v1739_v8, 16  ;;  %v906_v17 = vshll.u32 %v1739_v8, 16  ;;  %v958_v20 = vrot.slane %v895_v6, 4  ;;  %1385 = vmatprep.subr.bf16.mxu0 %v1490_v2 }
 0x10f   : > { %v838_v23 = vmax.f32 %v823_v12, 0.0  ;;  %v826_v24 = vadd.f32 %v825_v41, %v770_v13  ;;  %v1325_v25 = vpop.f32.mrb[8].mxu0  ;;  %v959_v27 = vrot.slane %v898_v7, 5 }
 0x110   : > { %v905_v28 = vrot.slane %v903_v16, 7  ;;  %v1326_v31 = vpop.f32.mrb[9].mxu0  ;;  %v1770_v34 = vrot.slane %v906_v17, 5  ;;  %v964_v35 = vrot.slane %v903_v16, 4  ;;  %v1772_v36 = vor.u32 %v898_v7, %v897_v15 }
 0x111   : > { %v853_v39 = vsel %vm1756_vm2, %v838_v23, 0.0  ;;  %v839_v40 = vmax.f32 %v826_v24, 0.0  ;;  %v1327_v41 = vadd.f32 %v1326_v31, %v1325_v25  ;;  %v1328_v42 = vpop.f32.mrb[10].mxu0  ;;  %v960_v43 = vor.u32 %v959_v27, %v958_v20  ;;  %v1476_v24 = vld [vmem:[%s1879_s3 + $0x18] sm:$0xff]  }
 0x112   : > { %v1294_v44 = vpack.c.bf16 %v853_v39, %v853_v39  ;;  %v1329_v45 = vpop.f32.mrb[11].mxu0  ;;  %v965_v46 = vor.u32 %v964_v35, %v1770_v34  ;;  %v908_v58 = vor.u32 %v906_v17, %v905_v28  ;;  %v910_v11 = vrot.slane %v905_v28, 4  ;;  %1412 = vmatpush3.bf16.msra.mxu1 %v1476_v24  ;;  %1386 = vmatpush3.bf16.msra.mxu0 %v1476_v24 }
 0x113   : > { %v854_v47 = vsel %vm1766_vm4, %v839_v40, 0.0  ;;  %v775_v49 = vadd.f32 %v1327_v41, %v1733_v29  ;;  %v1783_v50 = vrot.slane %v960_v43, 4  ;;  %v901_v29 = vrot.slane %v897_v15, 4  ;;  %1407 = vmatprep.subr.bf16.mxu1 %v1490_v2  ;;  %v1477_v40 = vld [vmem:[%s1879_s3 + $0x20] sm:$0xff]   ;;  %1387 = vmatprep.subr.bf16.mxu0 %v1490_v2  ;;  %v1478_v43 = vld [vmem:[%s1879_s3 + $0x28] sm:$0xff]  }
 0x114   : > { %v912_v51 = vshrl.u32 %v1294_v44, 16  ;;  %v915_v52 = vshll.u32 %v1294_v44, 16  ;;  %v1295_v54 = vpack.c.bf16 %v854_v47, %v854_v47  ;;  %876 = vrot.lane.b32.xlu1 %v1294_v44, %s1492_s28  ;;  %v1788_v55 = vrot.slane %v965_v46, 4 }
 0x115   : > { %v831_v56 = vadd.f32 %v830_v5, %v775_v49  ;;  %v963_v57 = vsel %vm1665_vm10, %v1783_v50, %v1770_v34  ;;  %v1801_v3 = vsel %vm1646_vm8, %v901_v29, %v908_v58  ;;  %vm1903_vm2 = vsmask.f32 1280 }
 0x116   : > { %v914_v59 = vrot.slane %v912_v51, 7  ;;  %v921_v60 = vshrl.u32 %v1295_v54, 16  ;;  %v924_v61 = vshll.u32 %v1295_v54, 16  ;;  %v967_v62 = vrot.slane %v915_v52, 5  ;;  %1413 = vmatpush3.bf16.msra.mxu1 %v1477_v40  ;;  %1388 = vmatpush3.bf16.msra.mxu0 %v1477_v40  ;;  %vm1003_vm4 = vmand %vm1002_vm1, %vm1903_vm2 }
 0x117   : > { %v840_v0 = vmax.f32 %v831_v56, 0.0  ;;  %v969_v1 = vrot.slane %v912_v51, 4  ;;  %1408 = vmatprep.subr.bf16.mxu1 %v1490_v2  ;;  %1389 = vmatprep.subr.bf16.mxu0 %v1490_v2 }
 0x118   : > { %v923_v4 = vrot.slane %v921_v60, 7  ;;  %878 = vrot.lane.b32.xlu1 %v1295_v54, %s1492_s28  ;;  %v972_v5 = vrot.slane %v924_v61, 5  ;;  %v968_v6 = vsel %vm1665_vm10, %v1788_v55, %v967_v62  ;;  %v974_v7 = vrot.slane %v921_v60, 4 }
 0x119   : > { %v855_v9 = vsel %vm326_vm6, %v840_v0, 0.0  ;;  %v970_v10 = vor.u32 %v969_v1, %v967_v62  ;;  %v917_v12 = vor.u32 %v915_v52, %v914_v59  ;;  %v919_v16 = vrot.slane %v914_v59, 4  ;;  %vm1008_vm6 = vmand %vm1007_vm3, %vm1904_vm5 }
 0x11a   : > { %v1296_v13 = vpack.c.bf16 %v855_v9, %v855_v9  ;;  %v975_v14 = vor.u32 %v974_v7, %v972_v5  ;;  %v926_v15 = vor.u32 %v924_v61, %v923_v4  ;;  %v928_v38 = vrot.slane %v923_v4, 4  ;;  %1414 = vmatpush3.bf16.msra.mxu1 %v1478_v43  ;;  %1390 = vmatpush3.bf16.msra.mxu0 %v1478_v43  ;;  %v1272_v61 = vld [vmem:[%s1880_s4] ss:$0 sm:$0xff] }
 0x11b   : > { %v971_v17 = vrot.slane %v970_v10, 4  ;;  %v918_v18 = vsel %vm1646_vm8, %v910_v11, %v917_v12 }
 0x11c   : > { %v930_v19 = vshrl.u32 %v1296_v13, 16  ;;  %v933_v20 = vshll.u32 %v1296_v13, 16  ;;  %880 = vrot.lane.b32.xlu0 %v1296_v13, %s1492_s28  ;;  %v927_v23 = vsel %vm1646_vm8, %v919_v16, %v926_v15  ;;  %v976_v30 = vrot.slane %v975_v14, 4 }
 0x11d   : > { %v973_v25 = vsel %vm1665_vm10, %v971_v17, %v972_v5 }
 0x11e   : > { %v932_v26 = vrot.slane %v930_v19, 7  ;;  %986 = vrot.lane.b32.xlu1 %v973_v25, %s1493_s13  ;;  %v977_v27 = vrot.slane %v933_v20, 5  ;;  %v979_v28 = vrot.slane %v930_v19, 4 }
 0x120   : > { %v980_v31 = vor.u32 %v979_v28, %v977_v27  ;;  %v978_v35 = vsel %vm1665_vm10, %v976_v30, %v977_v27  ;;  %v935_v39 = vor.u32 %v933_v20, %v932_v26  ;;  %vm892_vm10 = vcmask 517376  }
 0x122   : > { %874 = vrot.lane.b32.xlu1 %v1739_v8, %s1492_s28  ;;  %v981_v41 = vrot.slane %v980_v31, 4  ;;  %v936_v42 = vsel %vm1646_vm8, %v928_v38, %v935_v39  ;;  %vm887_vm8 = vcmask 519424  }
 0x124   : > { %990 = vrot.lane.b32.xlu0 %v981_v41, %s1493_s13 }
 0x126   : > { %984 = vrot.lane.b32.xlu1 %v968_v6, %s1493_s13 }
 0x128   : > { %988 = vrot.lane.b32.xlu0 %v978_v35, %s1493_s13 }
 0x12c   : > { %982 = vrot.lane.b32.xlu0 %v963_v57, %s1493_s13 }
 0x17e   : > { %v873_v37 = vpop.permute.xlu0 %872 }
 0x17f   : > { %888 = vst.msk [vmem:[#allocation3] sm:$0xf] %vm887_vm8, %v873_v37 }
 0x186   : > { %v944_v8 = vld [vmem:[#allocation3] sm:$0xf]  ;;  %v877_v44 = vpop.permute.xlu1 %876 }
 0x187   : > { %v945_v45 = vsel %vm943_vm11, %v1772_v36, %v944_v8  ;;  %890 = vst.msk [vmem:[#allocation3 + $0x8] sm:$0xf] %vm887_vm8, %v877_v44 }
 0x188   : > { %946 = vst [vmem:[#allocation3] sm:$0xf] %v945_v45  ;;  %949 = vst.msk [vmem:[#allocation3 + $0x8] sm:$0xf] %vm942_vm7, %v918_v18 }
 0x18a   : > { %v879_v53 = vpop.permute.xlu1 %878 }
 0x18b   : > { %891 = vst.msk [vmem:[#allocation3 + $0xc] sm:$0xf] %vm887_vm8, %v879_v53 }
 0x18c   : > { %950 = vst.msk [vmem:[#allocation3 + $0xc] sm:$0xf] %vm942_vm7, %v927_v23 }
 0x18e   : > { %v881_v34 = vpop.permute.xlu0 %880 }
 0x18f   : > { %v955_v46 = vld [vmem:[#allocation3] sm:$0x1]  ;;  %893 = vst.msk [vmem:[#allocation3 + $0x10] sm:$0x3] %vm892_vm10, %v881_v34 }
 0x190   : > { %v956_v36 = vsel %vm954_vm15, 0, %v955_v46  ;;  %952 = vst.msk [vmem:[#allocation3 + $0x10] sm:$0x3] %vm951_vm0, %v936_v42  ;;  %v987_v47 = vpop.permute.xlu1 %986 }
 0x191   : > { %957 = vst [vmem:[#allocation3] sm:$0x1] %v956_v36  ;;  %1000 = vst.msk [vmem:[#allocation3 + $0x8] sm:$0xf] %vm997_vm13, %v987_v47 }
 0x194   : > { %v875_v49 = vpop.permute.xlu1 %874 }
 0x195   : > { %889 = vst.msk [vmem:[#allocation3 + $0x4] sm:$0xf] %vm887_vm8, %v875_v49  ;;  %vm1085_vm8 = vcmask 785408  }
 0x196   : > { %948 = vst.msk [vmem:[#allocation3 + $0x4] sm:$0xf] %vm942_vm7, %v1801_v3  ;;  %v991_v50 = vpop.permute.xlu0 %990  ;;  %vm1905_vm7 = vmmov 0  }
 0x197   : > { %v1004_v51 = vld [vmem:[#allocation3 + $0x10] sm:$0x3] }
 0x198   : > { %v1005_v52 = vsel %vm1003_vm4, %v991_v50, %v1004_v51  ;;  %v985_v54 = vpop.permute.xlu1 %984 }
 0x199   : > { %1006 = vst [vmem:[#allocation3 + $0x10] sm:$0x3] %v1005_v52  ;;  %999 = vst.msk [vmem:[#allocation3 + $0x4] sm:$0xf] %vm997_vm13, %v985_v54 }
 0x19a   : > { %v989_v55 = vpop.permute.xlu0 %988 }
 0x19b   : > { %1001 = vst.msk [vmem:[#allocation3 + $0xc] sm:$0xf] %vm997_vm13, %v989_v55 }
 0x19e   : > { %v983_v56 = vpop.permute.xlu0 %982 }
 0x19f   : > { %998 = vst.msk [vmem:[#allocation3] sm:$0xf] %vm997_vm13, %v983_v56 }
 0x1a0   : > { %v1009_v57 = vld [vmem:[#allocation3 + $0x10] sm:$0x2]  ;;  %v1481_v60 = vld [vmem:[#allocation3 + $0x10] ss:$0 sps:$4 sm:$0x33]  }
 0x1a1   : > { %v1010_v29 = vsel %vm1008_vm6, 0, %v1009_v57 }
 0x1a2   : > { %1011 = vst [vmem:[#allocation3 + $0x10] sm:$0x2] %v1010_v29  ;;  %v1479_v58 = vld [vmem:[#allocation3 + $0x8] sm:$0xff]  }
 0x1a3   : > { %1396 = vmatmul.mubr.msk.bf16.vlgmr.msra.gmra.mrb[12].mxu1 %vm1085_vm8, %v1479_v58 }
 0x1a4   : > { %1399 = vmatprep.mubr.msk.bf16.mxu1 %vm1905_vm7, %v1490_v2 }
 0x1a6   : > { %v1480_v59 = vld [vmem:[#allocation3] sm:$0xff]  }
 0x1a7   : > { %1392 = vmatmul.mubr.msk.bf16.vlgmr.msra.gmra.mrb[12].mxu0 %vm1085_vm8, %v1480_v59 }
 0x1ab   : > { %1400 = vmatmul.mubr.msk.bf16.gmra.mrb[16].mxu1 %vm1085_vm8, %v1481_v60 }
 0x276   : > { %v1137_v62 = vpop.f32.mrb[12].mxu1 }
 0x277   : > { %v1138_v63 = vadd.f32 %v1272_v61, %v1137_v62  ;;  %v1397_v0 = vpop.f32.mrb[13].mxu1 }
 0x278   : > { %v1140_v1 = vpop.f32.mrb[14].mxu1 }
 0x279   : > { %v1153_v3 = vadd.f32 %v1138_v63, %v1635_v32  ;;  %v1141_v4 = vadd.f32 %v1272_v61, %v1140_v1  ;;  %v1398_v5 = vpop.f32.mrb[15].mxu1 }
 0x27a   : > { %v1129_v2 = vpop.f32.mrb[12].mxu0 }
 0x27b   : > { %v1158_v6 = vmax.f32 %v1153_v3, 0.0  ;;  %v1154_v7 = vadd.f32 %v1141_v4, %v1638_v33  ;;  %v1130_v9 = vadd.f32 %v1272_v61, %v1129_v2  ;;  %v1393_v10 = vpop.f32.mrb[13].mxu0 }
 0x27c   : > { %v1132_v11 = vpop.f32.mrb[14].mxu0 }
 0x27d   : > { %1163 = vst [vmem:[%s224_s24 + $0x10] sm:$0xff] %v1158_v6  ;;  %v1159_v12 = vmax.f32 %v1154_v7, 0.0  ;;  %v1151_v13 = vadd.f32 %v1130_v9, %v1615_v21  ;;  %v1133_v14 = vadd.f32 %v1272_v61, %v1132_v11  ;;  %v1394_v32 = vpop.f32.mrb[15].mxu0 }
 0x27e   : > { %v1145_v15 = vpop.f32.mrb[16].mxu1 }
 0x27f   : > { %1164 = vst [vmem:[%s224_s24 + $0x18] sm:$0xff] %v1159_v12  ;;  %v1156_v16 = vmax.f32 %v1151_v13, 0.0  ;;  %v1152_v17 = vadd.f32 %v1133_v14, %v1618_v22  ;;  %v1146_v18 = vadd.f32 %v1272_v61, %v1145_v15  ;;  %v1401_v19 = vpop.f32.mrb[17].mxu1 }
 0x280   : > { %v1148_v20 = vpop.f32.mrb[18].mxu1 }
 0x281   : > { %1161 = vst [vmem:[%s224_s24] sm:$0xff] %v1156_v16  ;;  %v1157_v23 = vmax.f32 %v1152_v17, 0.0  ;;  %v1155_v33 = vadd.f32 %v1146_v18, %v1661_v48  ;;  %v1402_v24 = vpop.f32.mrb[19].mxu1 }
 0x283   : > { %1162 = vst [vmem:[%s224_s24 + $0x8] sm:$0xff] %v1157_v23  ;;  %v1160_v25 = vmax.f32 %v1155_v33, 0.0 }
 0x285   : > { %1165 = vst [vmem:[%s224_s24 + $0x20] sm:$0xf] %v1160_v25 }
 0x286 PF: > { %s15_s18 = sadd.s32 1, %s1488_s18  }
 0x287   : > { %p12_p4 = scmp.ge.s32.totalorder %s15_s18, 4  }
 0x289   :  { %14 = sbr.rel (!%p12_p4) target bundleno = 1 (0x1), region = 70 }

</bundles_post_ra>
